<compile_context>
chip_gen: v6e
topology: v6e:2x2x1
jax: 0.10.0
libtpu: 0.0.40
codegen_flags: <defaults>
</compile_context>

<pallas_src>
import jax
import jax.numpy as jnp
from jax import lax
from jax.experimental import pallas as pl
from jax.experimental.pallas import tpu as pltpu


def _round_up(n: int, m: int) -> int:
    return (n + m - 1) // m * m


def popart_kernel(x_ref, w_ref, b_ref, s_ref, y_ref, yhat_ref):
    # x:   (TB, c_in)      batch tile
    # w:   (c_out, c_in)   resident
    # b:   (c_out, 1)      bias, resident
    # s:   (c_out, 1)      sigma * mu, resident
    # out: (c_out, TB)     transposed => lane-dense stores for small c_out
    x = x_ref[...]
    w = w_ref[...]
    # Contract on c_in of both operands directly: (c_out, c_in) x (TB, c_in)
    # -> (c_out, TB). No transpose needed anywhere in the kernel.
    y_hat = lax.dot_general(
        w, x,
        dimension_numbers=(((1,), (1,)), ((), ())),
        preferred_element_type=jnp.float32,
    )
    y_hat = y_hat + b_ref[...]          # broadcast (c_out, 1) over batch lanes
    yhat_ref[...] = y_hat
    y_ref[...] = y_hat * s_ref[...]     # scale = sigma * mu, folded in wrapper


def popart_forward(x, weight, bias, mu, sigma, *, block_b: int = 1024):
    """PopArt forward.

    x:      (B, c_in) float
    weight: (c_out, c_in)  (PyTorch nn.Linear convention)
    bias / mu / sigma: (c_out,)
    Returns (y, y_hat) with trailing size-1 axis squeezed (PyTorch .squeeze(-1)).
    """
    B, c_in = x.shape
    c_out, _ = weight.shape

    xf = x.astype(jnp.float32)
    wf = weight.astype(jnp.float32)
    b2 = bias.reshape(c_out, 1).astype(jnp.float32)
    scale = (sigma.astype(jnp.float32) * mu.astype(jnp.float32)).reshape(c_out, 1)

    # Batch tiling: small batches run as a single full block; large batches are
    # tiled in multiples of 128 rows (lane-aligned output tiles) and padded.
    if B <= block_b:
        tb, Bp = B, B
    else:
        tb = _round_up(block_b, 128)
        Bp = _round_up(B, tb)
        if Bp != B:
            xf = jnp.pad(xf, ((0, Bp - B), (0, 0)))
    grid = (Bp // tb,)

    y_t, yhat_t = pl.pallas_call(
        popart_kernel,
        out_shape=(
            jax.ShapeDtypeStruct((c_out, Bp), jnp.float32),
            jax.ShapeDtypeStruct((c_out, Bp), jnp.float32),
        ),
        grid=grid,
        in_specs=[
            pl.BlockSpec((tb, c_in), lambda i: (i, 0)),      # x: batch-tiled
            pl.BlockSpec((c_out, c_in), lambda i: (0, 0)),   # weight: resident
            pl.BlockSpec((c_out, 1), lambda i: (0, 0)),      # bias: resident
            pl.BlockSpec((c_out, 1), lambda i: (0, 0)),      # sigma*mu: resident
        ],
        out_specs=(
            pl.BlockSpec((c_out, tb), lambda i: (0, i)),     # y  (transposed)
            pl.BlockSpec((c_out, tb), lambda i: (0, i)),     # y_hat (transposed)
        ),
        compiler_params=pltpu.CompilerParams(
            dimension_semantics=("parallel",),               # v7x: 2 TCs
        ),
    )(xf, wf, b2, scale)

    # Drop batch padding, go back to (B, c_out), then PyTorch squeeze(-1).
    y_t = y_t[:, :B]
    yhat_t = yhat_t[:, :B]
    if c_out == 1:
        return y_t[0], yhat_t[0]         # transpose of (1, B) == reshape
    return y_t.T, yhat_t.T


def _reference(x, weight, bias, mu, sigma):
    y_hat = x @ weight.T + bias
    y = y_hat * sigma * mu
    if weight.shape[0] == 1:
        return y[..., 0], y_hat[..., 0]
    return y, y_hat


if __name__ == "__main__":
    key = jax.random.PRNGKey(0)

    def make_case(key, B, C_IN, C_OUT):
        kx, kw, kb, km, ks = jax.random.split(key, 5)
        x = jax.random.normal(kx, (B, C_IN), dtype=jnp.float32)
        bound = 1.0 / jnp.sqrt(jnp.float32(C_IN))
        weight = jax.random.uniform(kw, (C_OUT, C_IN), jnp.float32, -bound, bound)
        bias = jax.random.uniform(kb, (C_OUT,), jnp.float32, -bound, bound)
        # Buffers are zeros/ones in __init__; use non-trivial values so the
        # y = y_hat * sigma * mu path is actually exercised.
        mu = jax.random.normal(km, (C_OUT,), dtype=jnp.float32)
        sigma = jnp.abs(jax.random.normal(ks, (C_OUT,), dtype=jnp.float32)) + 0.5
        return x, weight, bias, mu, sigma

    k1, k2 = jax.random.split(key)

    # Case 1: PopArt value head (c_out = 1), batch not a multiple of the tile
    # so the multi-tile grid + padding + lane-dense transposed store path runs.
    x, w, b, mu, sg = make_case(k1, B=200, C_IN=32, C_OUT=1)
    y, y_hat = popart_forward(x, w, b, mu, sg, block_b=128)
    jax.block_until_ready((y, y_hat))
    y_ref, yhat_ref = _reference(x, w, b, mu, sg)
    assert y.shape == y_ref.shape and y_hat.shape == yhat_ref.shape
    assert jnp.allclose(y_hat, yhat_ref, atol=1e-5, rtol=1e-5)
    assert jnp.allclose(y, y_ref, atol=1e-5, rtol=1e-5)

    # Case 2: multi-output head (c_out > 1), single-block path (no squeeze).
    x, w, b, mu, sg = make_case(k2, B=64, C_IN=32, C_OUT=3)
    y, y_hat = popart_forward(x, w, b, mu, sg)
    jax.block_until_ready((y, y_hat))
    y_ref, yhat_ref = _reference(x, w, b, mu, sg)
    assert y.shape == y_ref.shape and y_hat.shape == yhat_ref.shape
    assert jnp.allclose(y_hat, yhat_ref, atol=1e-5, rtol=1e-5)
    assert jnp.allclose(y, y_ref, atol=1e-5, rtol=1e-5)

    print("KERNEL_OK")
</pallas_src>

<mosaic_0001>
module attributes {stable_mosaic.version = 11 : i64} {
  func.func @popart_kernel(%arg0: i32, %arg1: memref<128x32xf32, #tpu.memory_space<vmem>>, %arg2: memref<1x32xf32, #tpu.memory_space<vmem>>, %arg3: memref<1x1xf32, #tpu.memory_space<vmem>>, %arg4: memref<1x1xf32, #tpu.memory_space<vmem>>, %arg5: memref<1x128xf32, #tpu.memory_space<vmem>>, %arg6: memref<1x128xf32, #tpu.memory_space<vmem>>) attributes {dimension_semantics = [#tpu.dimension_semantics<parallel>], iteration_bounds = array<i64: 2>, scalar_prefetch = 0 : i64, scratch_operands = 0 : i64, tpu.core_type = #tpu.core_type<tc>, window_params = [{transform_indices = @transform_0, window_bounds = array<i64: 128, 32>}, {pipeline_mode = #tpu.pipeline_mode<synchronous>, transform_indices = @transform_1, window_bounds = array<i64: 1, 32>}, {pipeline_mode = #tpu.pipeline_mode<synchronous>, transform_indices = @transform_2, window_bounds = array<i64: 1, 1>}, {pipeline_mode = #tpu.pipeline_mode<synchronous>, transform_indices = @transform_3, window_bounds = array<i64: 1, 1>}, {transform_indices = @transform_4, window_bounds = array<i64: 1, 128>}, {transform_indices = @transform_5, window_bounds = array<i64: 1, 128>}]} {
    %c0 = arith.constant 0 : index
    %c0_0 = arith.constant 0 : index
    %0 = vector.load %arg1[%c0, %c0_0] : memref<128x32xf32, #tpu.memory_space<vmem>>, vector<128x32xf32>
    %c0_1 = arith.constant 0 : index
    %c0_2 = arith.constant 0 : index
    %1 = vector.load %arg2[%c0_1, %c0_2] : memref<1x32xf32, #tpu.memory_space<vmem>>, vector<1x32xf32>
    %cst = arith.constant dense<0.000000e+00> : vector<1x128xf32>
    %2 = tpu.matmul %1, %0, %cst {dimension_numbers = #tpu.dot_dimension_numbers<[1], [1], [0], [0], [0, 0, 1, 0], [], []>} : vector<1x32xf32>, vector<128x32xf32>, vector<1x128xf32> -> vector<1x128xf32>
    %c0_3 = arith.constant 0 : index
    %c0_4 = arith.constant 0 : index
    %3 = vector.load %arg3[%c0_3, %c0_4] : memref<1x1xf32, #tpu.memory_space<vmem>>, vector<1x1xf32>
    %4 = vector.broadcast %3 : vector<1x1xf32> to vector<1x128xf32>
    %5 = arith.addf %2, %4 : vector<1x128xf32>
    %c0_5 = arith.constant 0 : index
    %c0_6 = arith.constant 0 : index
    %6 = vector.load %arg6[%c0_5, %c0_6] : memref<1x128xf32, #tpu.memory_space<vmem>>, vector<1x128xf32>
    tpu.vector_store %arg6[%c0_5, %c0_6], %5 {strides = array<i32>} : memref<1x128xf32, #tpu.memory_space<vmem>>, vector<1x128xf32>,
    %c0_7 = arith.constant 0 : index
    %c0_8 = arith.constant 0 : index
    %7 = vector.load %arg4[%c0_7, %c0_8] : memref<1x1xf32, #tpu.memory_space<vmem>>, vector<1x1xf32>
    %8 = vector.broadcast %7 : vector<1x1xf32> to vector<1x128xf32>
    %9 = arith.mulf %5, %8 : vector<1x128xf32>
    %c0_9 = arith.constant 0 : index
    %c0_10 = arith.constant 0 : index
    %10 = vector.load %arg5[%c0_9, %c0_10] : memref<1x128xf32, #tpu.memory_space<vmem>>, vector<1x128xf32>
    tpu.vector_store %arg5[%c0_9, %c0_10], %9 {strides = array<i32>} : memref<1x128xf32, #tpu.memory_space<vmem>>, vector<1x128xf32>,
    return
  }
  func.func @transform_0(%arg0: i32) -> (i32, i32) {
    %c0_i32 = arith.constant 0 : i32
    %c0_i32_0 = arith.constant 0 : i32
    return %arg0, %c0_i32 : i32, i32
  }
  func.func @transform_1(%arg0: i32) -> (i32, i32) {
    %c0_i32 = arith.constant 0 : i32
    %c0_i32_0 = arith.constant 0 : i32
    %c0_i32_1 = arith.constant 0 : i32
    return %c0_i32, %c0_i32_0 : i32, i32
  }
  func.func @transform_2(%arg0: i32) -> (i32, i32) {
    %c0_i32 = arith.constant 0 : i32
    %c0_i32_0 = arith.constant 0 : i32
    %c0_i32_1 = arith.constant 0 : i32
    return %c0_i32, %c0_i32_0 : i32, i32
  }
  func.func @transform_3(%arg0: i32) -> (i32, i32) {
    %c0_i32 = arith.constant 0 : i32
    %c0_i32_0 = arith.constant 0 : i32
    %c0_i32_1 = arith.constant 0 : i32
    return %c0_i32, %c0_i32_0 : i32, i32
  }
  func.func @transform_4(%arg0: i32) -> (i32, i32) {
    %c0_i32 = arith.constant 0 : i32
    %c0_i32_0 = arith.constant 0 : i32
    return %c0_i32, %arg0 : i32, i32
  }
  func.func @transform_5(%arg0: i32) -> (i32, i32) {
    %c0_i32 = arith.constant 0 : i32
    %c0_i32_0 = arith.constant 0 : i32
    return %c0_i32, %arg0 : i32, i32
  }
}

</mosaic_0001>

<bundles_post_ra>
// kernel: tpu_custom_call.1
= control target key start
LH: loop header
LB: loop body
LE: loop exit
PB: predicated region body
PF: predicated region fallthrough
CT: control target
= control target key end

     0   :  { %s947_s0 = inlined_call_operand.vmem [shape: f32[256,32], index: 0, kind: input, shape index: {}]   ;;  %s948_s1 = inlined_call_operand.vmem [shape: f32[1,32], index: 1, kind: input, shape index: {}]   ;;  %s949_s2 = inlined_call_operand.<no memory space> [shape: f32[1,1], index: 2, kind: input, shape index: {}]   ;;  %s950_s4 = inlined_call_operand.hbm [shape: f32[1,256], index: 4, kind: output, shape index: {0}]   ;;  %s951_s5 = inlined_call_operand.hbm [shape: f32[1,256], index: 5, kind: output, shape index: {1}]   ;;  %s952_s3 = inlined_call_operand.<no memory space> [shape: f32[1,1], index: 3, kind: input, shape index: {}]  }
   0x1   :  { %v11_v0 = vstv %s949_s2  ;;  %v13_v1 = vstv %s952_s3 }
   0x2   :  { %12 = vst [vmem:[#allocation2] sm:$0x1] %v11_v0  ;;  %14 = vst [vmem:[#allocation3] sm:$0x1] %v13_v1 }
   0x3   :  { %15 = vsyncpa [#allocation5], 0 }
   0x4   :  { %17 = vsyncpa [#allocation5 + $0x1], 0 }
   0x5   :  { %18 = vsyncpa [#allocation7], 0 }
   0x6   :  { %20 = vsyncpa [#allocation7 + $0x1], 0  ;;  %s773_s22 = smov 0   ;;  %s775_s23 = smov 0  }
   0x7   :  { %s777_s24 = smov 0   ;;  %s779_s25 = smov 0  }
   0x8 LB: > { %s512_s2 = sadd.s32 4294967295, %s730_s25   ;;  %s513_s3 = sadd.s32 4294967294, %s730_s25   ;;  %s730_s25 = sphi %s779_s25, %s958_s25   ;;  %s726_s24 = sphi %s777_s24, %s957_s24   ;;  %s722_s23 = sphi %s775_s23, %s956_s23   ;;  %s718_s22 = sphi %s773_s22, %s955_s22  }
   0x9   : > { %s796_s26 = sadd.s32 1, %s730_s25   ;;  %s122_s27 = sadd.s32 1, %s726_s24 }
   0xa   : > { %s119_s28 = ssub.s32 %s730_s25, %s796_s26  ;;  %p132_p0 = scmp.ne.s32.totalorder %s726_s24, %s722_s23 }
   0xb   : > { %p120_p1 = scmp.eq.s32.totalorder %s119_s28, 0  ;;  %p133_p2 = scmp.eq.s32.totalorder %s512_s2, 1 }
   0xc   : > { %p138_p3 = scmp.ne.s32.totalorder %s722_s23, %s718_s22  ;;  %p139_p4 = scmp.eq.s32.totalorder %s513_s3, 1 }
   0xd   : > { %s806_s29 = scalar_select %p120_p1, %s726_s24, %s122_s27  }
   0xe   : > { %p808_p5 = por %p133_p2, %p132_p0  ;;  %p812_p6 = por %p139_p4, %p138_p3 }
   0xf   : > { %p516_p7 = scmp.ge.s32.totalorder %s730_s25, 1  ;;  %p201_p8 = scmp.lt.s32.totalorder %s730_s25, 3 }
  0x11   : > { %p202_p9 = pnand %p516_p7, %p201_p8 }
  0x12   : > { %s818_s7 = sshll.u32 (!%p202_p9), %s512_s2, 4  ;;  %s864_s15 = sand.u32 (!%p202_p9), 1, %s722_s23  }
  0x13   : > { %205 = sbr.rel (%p202_p9) target bundleno = 322 (0x142), region = 36  ;;  %p233_p10 = scmp.lt.s32.totalorder (!%p202_p9), %s818_s7, 31 }
  0x14   : > { %s231_s16 = scalar_lea.vmem (!%p202_p9), [#allocation6], %s864_s15  ;;  %s225_s18 = scalar_lea.vmem (!%p202_p9), [#allocation4], %s864_s15 }
  0x15   : > { %s430_s17 = sshll.u32 (!%p202_p9), %s231_s16, 4  ;;  %s417_s19 = sshll.u32 (!%p202_p9), %s225_s18, 4  ;;  %s876_s17 = int_to_ptr.vmem [resolvable:$true] %s430_s17  ;;  %s884_s19 = int_to_ptr.vmem [resolvable:$true] %s417_s19 }
  0x16   : > { %s874_s2 = scalar_lea.hbm (!%p202_p9), %s951_s5, %s818_s7  ;;  %s882_s28 = scalar_lea.hbm (!%p202_p9), %s950_s4, %s818_s7 }
  0x17   : > { %s735_s10 = smov (!%p202_p9), [#allocation6]  }
  0x18   : > { %v732_v2 = vmov 0.0   ;;  %vm733_vm0 = vmmov 0   ;;  %v255_v3 = vld [vmem:[#allocation2] sm:$0x1]  ;;  %v734_v4 = vmov 0   ;;  %s234_s8 = scalar_select %p233_p10, %s818_s7, 31  ;;  %v261_v23 = vlaneseq }
  0x19   : > { %557 = vmatprep.subr.mxu0 %v732_v2  ;;  %589 = vmatprep.mubr.msk.f32.mxu0 %vm733_vm0, %v732_v2  ;;  %v388_v5 = vld [vmem:[#allocation3] sm:$0x1]  ;;  %vm265_vm1 = vcmask 261120   ;;  %v254_v22 = vld [vmem:[%s948_s1] sm:$0x1]  ;;  %s644_s11 = sshll.u32 %s735_s10, 4  ;;  %s645_s11 = int_to_ptr.vmem [resolvable:$false] %s644_s11 }
  0x1a   : > { %639 = vset.pattern.permute.xlu0 %v734_v4  ;;  %s518_s9 = sshll.u32 %s234_s8, 3  ;;  %v262_v24 = vshrl.u32 %v261_v23, 7  ;;  %s405_s8 = scalar_lea.sflag [#allocation7], %s864_s15 }
  0x1b   : > { %258 = vperm.xlu0 %639, %v255_v3   ;;  %s825_s12 = scalar_lea.vmem %s947_s0, %s518_s9  ;;  %s640_s9 = scalar_lea.vmem %s876_s17, 16 }
  0x1c   : > { %v253_v6 = vld [vmem:[%s825_s12 + $0x78] sm:$0xff]  ;;  %v252_v7 = vld [vmem:[%s825_s12 + $0x70] sm:$0xff]  ;;  %v251_v8 = vld [vmem:[%s825_s12 + $0x68] sm:$0xff]  ;;  %v263_v26 = vsub.s32 0, %v262_v24  ;;  %p641_p11 = scmp.ne.s32.totalorder %s876_s17, %s640_s9  ;;  %p647_p0 = scmp.lt.s32.totalorder %s876_s17, %s645_s11 }
  0x1d   : > { %558 = vmatpush3.xpose.msk.msra.mxu0 %vm265_vm1, %v253_v6  ;;  %v250_v9 = vld [vmem:[%s825_s12 + $0x60] sm:$0xff]  ;;  %v249_v10 = vld [vmem:[%s825_s12 + $0x58] sm:$0xff]  ;;  %v248_v11 = vld [vmem:[%s825_s12 + $0x50] sm:$0xff] }
  0x1e   : > { %559 = vmatprep.subr.mxu0 %v732_v2  ;;  %v247_v12 = vld [vmem:[%s825_s12 + $0x48] sm:$0xff]  ;;  %v246_v13 = vld [vmem:[%s825_s12 + $0x40] sm:$0xff]  ;;  %v245_v14 = vld [vmem:[%s825_s12 + $0x38] sm:$0xff]  ;;  %p642_p12 = pnand %p641_p11, %p808_p5 }
  0x1f   : > { %391 = vperm.xlu0 %639, %v388_v5   ;;  %v244_v15 = vld [vmem:[%s825_s12 + $0x30] sm:$0xff]  ;;  %v243_v16 = vld [vmem:[%s825_s12 + $0x28] sm:$0xff]  ;;  %v242_v17 = vld [vmem:[%s825_s12 + $0x20] sm:$0xff] }
  0x20   : > { %v241_v18 = vld [vmem:[%s825_s12 + $0x18] sm:$0xff]  ;;  %v240_v19 = vld [vmem:[%s825_s12 + $0x10] sm:$0xff]  ;;  %v239_v20 = vld [vmem:[%s825_s12 + $0x8] sm:$0xff]  ;;  %p643_p13 = pneg %p642_p12 }
  0x21   : > { %560 = vmatpush3.xpose.msk.msra.mxu0 %vm265_vm1, %v252_v7  ;;  %v238_v21 = vld [vmem:[%s825_s12] sm:$0xff]  ;;  %s646_s12 = scalar_lea.vmem %s645_s11, 32 }
  0x22   : > { %561 = vmatprep.subr.mxu0 %v732_v2  ;;  %p648_p1 = scmp.lt.s32.totalorder %s646_s12, %s640_s9 }
  0x24   : > { %p649_p2 = por %p648_p1, %p647_p0 }
  0x25   : > { %562 = vmatpush3.xpose.msk.msra.mxu0 %vm265_vm1, %v251_v8 }
  0x26   : > { %563 = vmatprep.subr.mxu0 %v732_v2  ;;  %p650_p3 = pnand %p649_p2, %p643_p13 }
  0x29   : > { %564 = vmatpush3.xpose.msk.msra.mxu0 %vm265_vm1, %v250_v9 }
  0x2a   : > { %565 = vmatprep.subr.mxu0 %v732_v2 }
  0x2d   : > { %566 = vmatpush3.xpose.msk.msra.mxu0 %vm265_vm1, %v249_v10 }
  0x2e   : > { %567 = vmatprep.subr.mxu0 %v732_v2 }
  0x31   : > { %568 = vmatpush3.xpose.msk.msra.mxu0 %vm265_vm1, %v248_v11 }
  0x32   : > { %569 = vmatprep.subr.mxu0 %v732_v2 }
  0x35   : > { %570 = vmatpush3.xpose.msk.msra.mxu0 %vm265_vm1, %v247_v12 }
  0x36   : > { %571 = vmatprep.subr.mxu0 %v732_v2 }
  0x39   : > { %572 = vmatpush3.xpose.msk.msra.mxu0 %vm265_vm1, %v246_v13 }
  0x3a   : > { %573 = vmatprep.subr.mxu0 %v732_v2 }
  0x3d   : > { %574 = vmatpush3.xpose.msk.msra.mxu0 %vm265_vm1, %v245_v14 }
  0x3e   : > { %575 = vmatprep.subr.mxu0 %v732_v2 }
  0x41   : > { %576 = vmatpush3.xpose.msk.msra.mxu0 %vm265_vm1, %v244_v15 }
  0x42   : > { %577 = vmatprep.subr.mxu0 %v732_v2 }
  0x45   : > { %578 = vmatpush3.xpose.msk.msra.mxu0 %vm265_vm1, %v243_v16 }
  0x46   : > { %579 = vmatprep.subr.mxu0 %v732_v2 }
  0x49   : > { %580 = vmatpush3.xpose.msk.msra.mxu0 %vm265_vm1, %v242_v17 }
  0x4a   : > { %581 = vmatprep.subr.mxu0 %v732_v2 }
  0x4d   : > { %582 = vmatpush3.xpose.msk.msra.mxu0 %vm265_vm1, %v241_v18 }
  0x4e   : > { %583 = vmatprep.subr.mxu0 %v732_v2 }
  0x51   : > { %584 = vmatpush3.xpose.msk.msra.mxu0 %vm265_vm1, %v240_v19 }
  0x52   : > { %585 = vmatprep.subr.mxu0 %v732_v2 }
  0x55   : > { %586 = vmatpush3.xpose.msk.msra.mxu0 %vm265_vm1, %v239_v20 }
  0x56   : > { %587 = vmatprep.subr.mxu0 %v732_v2 }
  0x59   : > { %588 = vmatpush3.xpose.msk.msra.mxu0 %vm265_vm1, %v238_v21 }
  0x5c   : > { %590 = vmatmul.mubr.msk.f32.vlgmr.msra.gmra.mxu0 %vm265_vm1, %v254_v22 }
  0x96   : > { %v259_v25 = vpop.permute.xlu0 %258 }
  0x97   : > { %v264_v28 = vrot.slane %v259_v25, %v263_v26 }
  0x9a   : > { %v392_v27 = vpop.permute.xlu0 %391 }
  0x9b   : > { %v397_v30 = vrot.slane %v392_v27, %v263_v26 }
 0x11c   : > { %v383_v29 = vpop.f32.mrf.mxu0 }
 0x11d   : > { %v384_v31 = vadd.f32 %v383_v29, %v264_v28 }
 0x11e   : > { %v591_v32 = vpop.f32.mrf.mxu0 }
 0x11f   : > { %387 = vst [vmem:[%s231_s16] sm:$0x1] %v384_v31  ;;  %v398_v33 = vmul.f32 %v397_v30, %v384_v31 }
 0x120   : > { %653 = shalt.err (!%p650_p3)
}
 0x121   : > { %s654_s7 = scalar_lea.hbm %s874_s2, 16  ;;  %s658_s16 = scalar_lea.hbm %s951_s5, 32 }
 0x122   : > { %p655_p4 = scmp.ne.s32.totalorder %s874_s2, %s654_s7  ;;  %p659_p9 = scmp.lt.s32.totalorder %s874_s2, %s951_s5 }
 0x123   : > { %p660_p10 = scmp.lt.s32.totalorder %s658_s16, %s654_s7 }
 0x124   : > { %p656_p7 = pnand %p655_p4, %p808_p5 }
 0x125   : > { %p661_p11 = por %p660_p10, %p659_p9 }
 0x126   : > { %p657_p8 = pneg %p656_p7 }
 0x128   : > { %p662_p12 = pnand %p661_p11, %p657_p8 }
 0x12a   : > { %665 = shalt.err (!%p662_p12)
}
 0x12b   : > { %593 = dma.vmem_to_hbm [thread:$0]  (%p808_p5), %s876_s17, 16, %s874_s2, %s405_s8   ;;  %399 = vst [vmem:[%s225_s18] sm:$0x1] %v398_v33 }
 0x12c   : > { %s401_s3 = scalar_lea.sflag [#allocation5], %s864_s15  ;;  %s666_s27 = scalar_lea.vmem %s884_s19, 16 }
 0x12d   : > { %p667_p13 = scmp.ne.s32.totalorder %s884_s19, %s666_s27  ;;  %s736_s9 = smov [#allocation4]  }
 0x12e   : > { %s670_s10 = sshll.u32 %s736_s9, 4  ;;  %s671_s10 = int_to_ptr.vmem [resolvable:$false] %s670_s10 }
 0x12f   : > { %p668_p0 = pnand %p667_p13, %p808_p5  ;;  %s672_s11 = scalar_lea.vmem %s671_s10, 32 }
 0x130   : > { %p673_p2 = scmp.lt.s32.totalorder %s884_s19, %s671_s10  ;;  %p674_p3 = scmp.lt.s32.totalorder %s672_s11, %s666_s27 }
 0x131   : > { %p669_p1 = pneg %p668_p0 }
 0x132   : > { %p675_p4 = por %p674_p3, %p673_p2 }
 0x134   : > { %p676_p7 = pnand %p675_p4, %p669_p1 }
 0x136   : > { %679 = shalt.err (!%p676_p7)
}
 0x137   : > { %s680_s17 = scalar_lea.hbm %s882_s28, 16  ;;  %s684_s2 = scalar_lea.hbm %s950_s4, 32 }
 0x138   : > { %p681_p8 = scmp.ne.s32.totalorder %s882_s28, %s680_s17  ;;  %p685_p11 = scmp.lt.s32.totalorder %s882_s28, %s950_s4 }
 0x139   : > { %p686_p12 = scmp.lt.s32.totalorder %s684_s2, %s680_s17 }
 0x13a   : > { %p682_p9 = pnand %p681_p8, %p808_p5 }
 0x13b   : > { %p687_p13 = por %p686_p12, %p685_p11 }
 0x13c   : > { %p683_p10 = pneg %p682_p9 }
 0x13e   : > { %p688_p0 = pnand %p687_p13, %p683_p10 }
 0x140   : > { %691 = shalt.err (!%p688_p0)
}
 0x141   : > { %592 = dma.vmem_to_hbm [thread:$0]  (%p808_p5), %s884_s19, 16, %s882_s28, %s401_s3  }
 0x142 PF: > { %p603_p1 = scmp.ge.s32.totalorder %s730_s25, 2  ;;  %s442_s7 = sand.u32 1, %s718_s22  }
 0x143   : > { %s443_s13 = scalar_lea.sflag [#allocation5], %s442_s7 }
 0x144   : > { %p597_p2 = pnand %p603_p1, %p812_p6 }
 0x146   : > { %p598_p3 = pneg %p597_p2 }
 0x148   : > { %709 = dma.done.wait (%p598_p3), %s443_s13, 16  }
 0x149   : > { %711 = vsyncadd (%p598_p3), %s443_s13, 4294967280  ;;  %s451_s14 = scalar_lea.sflag [#allocation7], %s442_s7 }
 0x14a   : > { %713 = dma.done.wait (%p598_p3), %s451_s14, 16  }
 0x14b   : > { %715 = vsyncadd (%p598_p3), %s451_s14, 4294967280  ;;  %p23_p5 = scmp.ge.s32.totalorder %s796_s26, 4   ;;  %s955_s22 = smov %s722_s23 }
 0x14c   : > { %s956_s23 = smov %s726_s24  ;;  %s957_s24 = smov %s806_s29 }
 0x14d   : > { %s958_s25 = smov %s796_s26  ;;  %25 = sbr.rel (!%p23_p5) target bundleno = 8 (0x8), region = 88 }
 0x152   :  { %455 = vsyncpa [#allocation5], 1 }
 0x153   :  { %457 = vsyncpa [#allocation5 + $0x1], 1 }
 0x154   :  { %458 = vsyncpa [#allocation7], 1 }
 0x155   :  { %460 = vsyncpa [#allocation7 + $0x1], 1 }

</bundles_post_ra>
